<compile_context>
chip_gen: v7x
topology: tpu7x:2x2x1
jax: 0.10.0
libtpu: 0.0.40
codegen_flags: <defaults>
</compile_context>

<pallas_src>
import jax
import jax.numpy as jnp
import numpy as np
from jax import lax
from jax.experimental import pallas as pl
from jax.experimental.pallas import tpu as pltpu


def encoder_kernel(enc_ref, mask_ref, we_ref, bc_ref, wc_ref, w2_ref, b2_ref,
                   out_ref):
    Bt, S, D = enc_ref.shape
    H = we_ref.shape[1]

    enc = enc_ref[...].reshape(Bt * S, D)        # (Bt*S, D)
    mask = mask_ref[...]                          # (Bt, 1, S)  1.0 = valid key

    bc = bc_ref[...]
    be = bc[0:1, :]                               # embeds2input bias   (1, H)
    b1 = bc[1:2, :]                               # hidden2output1 bias (1, H)
    wc = wc_ref[...]
    wa = wc[0:H, :]                               # att weight          (H, H)
    w1 = wc[H:, :]                                # hidden2output1      (3H, H)

    # input = ReLU(embeds2input(enc))  -- all Bt sequences in a single MXU call
    x = jnp.dot(enc, we_ref[...], preferred_element_type=jnp.float32) + be
    x = jnp.maximum(x, 0.0)                       # (Bt*S, H)

    # intermediate = att(input)
    inter = jnp.dot(x, wa, preferred_element_type=jnp.float32)   # (Bt*S, H)

    x3 = x.reshape(Bt, S, H)
    inter3 = inter.reshape(Bt, S, H)

    # scores = intermediate @ input^T : batched contraction on the last dims
    # (no explicit transpose / XLU relayout of x).
    scores = lax.dot_general(inter3, x3,
                             dimension_numbers=(((2,), (2,)), ((0,), (0,))),
                             preferred_element_type=jnp.float32)  # (Bt, S, S)

    # scores.masked_fill_(tag_masks.unsqueeze(1) == 0, -10000.0)
    scores = jnp.where(mask == 0.0, jnp.float32(-10000.0), scores)

    # hard attention: torch uses (max == scores) masked_fill -> multi-hot on
    # exact ties; identical semantics here.
    row_max = jnp.max(scores, axis=-1, keepdims=True)
    hard = jnp.where(scores == row_max, jnp.float32(1.0), jnp.float32(0.0))

    # soft attention: softmax over the key dim
    e = jnp.exp(scores - row_max)
    p = e / jnp.sum(e, axis=-1, keepdims=True)                    # (Bt, S, S)

    att_soft = lax.dot_general(p, x3, (((2,), (1,)), ((0,), (0,))),
                               preferred_element_type=jnp.float32)  # (Bt,S,H)
    att_hard = lax.dot_general(hard, x3, (((2,), (1,)), ((0,), (0,))),
                               preferred_element_type=jnp.float32)  # (Bt,S,H)

    # hidden2output1(cat([x, soft, hard], -1)): single fused (Bt*S,3H)@(3H,H)
    cat = jnp.concatenate(
        [x, att_soft.reshape(Bt * S, H), att_hard.reshape(Bt * S, H)], axis=-1)
    h = jnp.maximum(jnp.dot(cat, w1, preferred_element_type=jnp.float32) + b1,
                    0.0)                                           # (Bt*S, H)

    # hidden2output2 + log_softmax over the lane-padded label dim.  Padding
    # columns have weight 0 and bias -1e30, so they contribute 0 to the
    # log-sum-exp and the valid columns are exact.
    logits = (jnp.dot(h, w2_ref[...], preferred_element_type=jnp.float32)
              + b2_ref[...])                                       # (Bt*S, LP)
    lmax = jnp.max(logits, axis=-1, keepdims=True)
    lse = jnp.log(jnp.sum(jnp.exp(logits - lmax), axis=-1, keepdims=True)) + lmax
    out_ref[...] = (logits - lse).reshape(Bt, S, -1)


def encoder_forward(enc, tag_masks, params, *, bt=None):
    B, S, D = enc.shape
    H = params["we"].shape[1]
    L = params["w2"].shape[1]
    LP = 128  # pad labels to a full lane group -> unmasked vector stores

    # Batch tile: as many sequences per grid step as possible (up to 8),
    # keeping B % bt == 0 so every block is full.
    if bt is None:
        bt = min(B, 8)
        while B % bt:
            bt -= 1
    assert B % bt == 0

    mask3 = tag_masks.reshape(B, 1, S).astype(jnp.float32)

    # Pack small parameters -> fewer pipelined inputs / DMA descriptors.
    bc = jnp.concatenate([params["be"], params["b1"]], axis=0)        # (2, H)
    wc = jnp.concatenate([params["wa"], params["w1x"],
                          params["w1a"], params["w1h"]], axis=0)      # (4H, H)
    w2p = jnp.zeros((H, LP), jnp.float32).at[:, :L].set(params["w2"])
    b2p = jnp.full((1, LP), -1e30, jnp.float32).at[:, :L].set(params["b2"])

    out = pl.pallas_call(
        encoder_kernel,
        out_shape=jax.ShapeDtypeStruct((B, S, LP), jnp.float32),
        grid=(B // bt,),
        in_specs=[
            pl.BlockSpec((bt, S, D), lambda b: (b, 0, 0)),   # enc tile
            pl.BlockSpec((bt, 1, S), lambda b: (b, 0, 0)),   # tag mask tile
            pl.BlockSpec((D, H), lambda b: (0, 0)),          # embeds2input W
            pl.BlockSpec((2, H), lambda b: (0, 0)),          # [be; b1]
            pl.BlockSpec((4 * H, H), lambda b: (0, 0)),      # [wa; w1x; w1a; w1h]
            pl.BlockSpec((H, LP), lambda b: (0, 0)),         # hidden2output2 W (lane-padded)
            pl.BlockSpec((1, LP), lambda b: (0, 0)),         # hidden2output2 b (lane-padded)
        ],
        out_specs=pl.BlockSpec((bt, S, LP), lambda b: (b, 0, 0)),
        compiler_params=pltpu.CompilerParams(
            dimension_semantics=("parallel",)),
    )(enc, mask3, params["we"], bc, wc, w2p, b2p)

    return out[..., :L]


def encoder_reference(enc, tag_masks, params):
    """Pure-JAX reference mirroring the PyTorch forward (train=False)."""
    x = jnp.maximum(enc @ params["we"] + params["be"], 0.0)           # (B,S,H)
    inter = x @ params["wa"]
    scores = jnp.einsum("bik,bjk->bij", inter, x)
    mask = (tag_masks[:, None, :] == 0)
    scores = jnp.where(mask, -10000.0, scores)
    row_max = jnp.max(scores, axis=-1, keepdims=True)
    hard = jnp.where(scores == row_max, 1.0, 0.0)
    p = jax.nn.softmax(scores, axis=-1)
    att_soft = jnp.einsum("bij,bjd->bid", p, x)
    att_hard = jnp.einsum("bij,bjd->bid", hard, x)
    h = jnp.maximum(x @ params["w1x"] + att_soft @ params["w1a"]
                    + att_hard @ params["w1h"] + params["b1"], 0.0)
    logits = h @ params["w2"] + params["b2"]
    return jax.nn.log_softmax(logits, axis=-1)


if __name__ == "__main__":
    B, S, D, H, L = 2, 8, 768, 32, 8   # batch, seq, bert-dim, hidden_dim, labelSize

    key = jax.random.PRNGKey(0)
    keys = jax.random.split(key, 10)

    # Deterministic synthetic parameters (shapes from Encoder.__init__).
    params = {
        "we":  jax.random.normal(keys[0], (D, H), jnp.float32) * 0.02,   # embeds2input.weight^T
        "be":  jax.random.normal(keys[1], (1, H), jnp.float32) * 0.02,
        "wa":  jax.random.normal(keys[2], (H, H), jnp.float32) * 0.1,    # att.weight^T
        "w1x": jax.random.normal(keys[3], (H, H), jnp.float32) * 0.1,    # hidden2output1 rows 0:H ^T
        "w1a": jax.random.normal(keys[4], (H, H), jnp.float32) * 0.1,    # hidden2output1 rows H:2H ^T
        "w1h": jax.random.normal(keys[5], (H, H), jnp.float32) * 0.1,    # hidden2output1 rows 2H:3H ^T
        "b1":  jax.random.normal(keys[6], (1, H), jnp.float32) * 0.1,
        "w2":  jax.random.normal(keys[7], (H, L), jnp.float32) * 0.1,    # hidden2output2.weight^T
        "b2":  jax.random.normal(keys[8], (1, L), jnp.float32) * 0.1,
    }

    # Synthetic post-BERT padded embeddings and tag mask (valid lengths 8 and 5).
    enc = jax.random.normal(keys[9], (B, S, D), jnp.float32)
    tag_masks = jnp.array([[1, 1, 1, 1, 1, 1, 1, 1],
                           [1, 1, 1, 1, 1, 0, 0, 0]], dtype=jnp.float32)

    out = encoder_forward(enc, tag_masks, params)
    out = jax.block_until_ready(out)

    ref = encoder_reference(enc, tag_masks, params)
    np.testing.assert_allclose(np.asarray(out), np.asarray(ref),
                               rtol=1e-4, atol=1e-4)

    print("KERNEL_OK")
</pallas_src>

<mosaic_0001>
module attributes {stable_mosaic.version = 11 : i64} {
  func.func @encoder_kernel(%arg0: i32, %arg1: memref<2x8x768xf32, #tpu.memory_space<vmem>>, %arg2: memref<2x1x8xf32, #tpu.memory_space<vmem>>, %arg3: memref<768x32xf32, #tpu.memory_space<vmem>>, %arg4: memref<2x32xf32, #tpu.memory_space<vmem>>, %arg5: memref<128x32xf32, #tpu.memory_space<vmem>>, %arg6: memref<32x128xf32, #tpu.memory_space<vmem>>, %arg7: memref<1x128xf32, #tpu.memory_space<vmem>>, %arg8: memref<2x8x128xf32, #tpu.memory_space<vmem>>) attributes {dimension_semantics = [#tpu.dimension_semantics<parallel>], iteration_bounds = array<i64: 1>, scalar_prefetch = 0 : i64, scratch_operands = 0 : i64, tpu.core_type = #tpu.core_type<tc>, window_params = [{transform_indices = @transform_0, window_bounds = array<i64: 2, 8, 768>}, {transform_indices = @transform_1, window_bounds = array<i64: 2, 1, 8>}, {pipeline_mode = #tpu.pipeline_mode<synchronous>, transform_indices = @transform_2, window_bounds = array<i64: 768, 32>}, {pipeline_mode = #tpu.pipeline_mode<synchronous>, transform_indices = @transform_3, window_bounds = array<i64: 2, 32>}, {pipeline_mode = #tpu.pipeline_mode<synchronous>, transform_indices = @transform_4, window_bounds = array<i64: 128, 32>}, {pipeline_mode = #tpu.pipeline_mode<synchronous>, transform_indices = @transform_5, window_bounds = array<i64: 32, 128>}, {pipeline_mode = #tpu.pipeline_mode<synchronous>, transform_indices = @transform_6, window_bounds = array<i64: 1, 128>}, {transform_indices = @transform_7, window_bounds = array<i64: 2, 8, 128>}]} {
    %c0 = arith.constant 0 : index
    %c0_0 = arith.constant 0 : index
    %c0_1 = arith.constant 0 : index
    %0 = vector.load %arg1[%c0, %c0_0, %c0_1] : memref<2x8x768xf32, #tpu.memory_space<vmem>>, vector<2x8x768xf32>
    %1 = vector.shape_cast %0 : vector<2x8x768xf32> to vector<16x768xf32>
    %c0_2 = arith.constant 0 : index
    %c0_3 = arith.constant 0 : index
    %c0_4 = arith.constant 0 : index
    %2 = vector.load %arg2[%c0_2, %c0_3, %c0_4] : memref<2x1x8xf32, #tpu.memory_space<vmem>>, vector<2x1x8xf32>
    %c0_5 = arith.constant 0 : index
    %c0_6 = arith.constant 0 : index
    %3 = vector.load %arg4[%c0_5, %c0_6] : memref<2x32xf32, #tpu.memory_space<vmem>>, vector<2x32xf32>
    %4 = vector.extract_strided_slice %3 {offsets = [0, 0], sizes = [1, 32], strides = [1, 1]} : vector<2x32xf32> to vector<1x32xf32>
    %5 = vector.extract_strided_slice %3 {offsets = [1, 0], sizes = [1, 32], strides = [1, 1]} : vector<2x32xf32> to vector<1x32xf32>
    %c0_7 = arith.constant 0 : index
    %c0_8 = arith.constant 0 : index
    %6 = vector.load %arg5[%c0_7, %c0_8] : memref<128x32xf32, #tpu.memory_space<vmem>>, vector<128x32xf32>
    %7 = vector.extract_strided_slice %6 {offsets = [0, 0], sizes = [32, 32], strides = [1, 1]} : vector<128x32xf32> to vector<32x32xf32>
    %8 = vector.extract_strided_slice %6 {offsets = [32, 0], sizes = [96, 32], strides = [1, 1]} : vector<128x32xf32> to vector<96x32xf32>
    %c0_9 = arith.constant 0 : index
    %c0_10 = arith.constant 0 : index
    %9 = vector.load %arg3[%c0_9, %c0_10] : memref<768x32xf32, #tpu.memory_space<vmem>>, vector<768x32xf32>
    %cst = arith.constant dense<0.000000e+00> : vector<16x32xf32>
    %10 = tpu.matmul %1, %9, %cst {dimension_numbers = #tpu.dot_dimension_numbers<[1], [0], [0], [1], [0, 0, 1, 1], [], []>} : vector<16x768xf32>, vector<768x32xf32>, vector<16x32xf32> -> vector<16x32xf32>
    %11 = vector.broadcast %4 : vector<1x32xf32> to vector<16x32xf32>
    %12 = arith.addf %10, %11 : vector<16x32xf32>
    %cst_11 = arith.constant 0.000000e+00 : f32
    %13 = vector.broadcast %cst_11 : f32 to vector<16x32xf32>
    %14 = arith.maximumf %12, %13 : vector<16x32xf32>
    %cst_12 = arith.constant dense<0.000000e+00> : vector<16x32xf32>
    %15 = tpu.matmul %14, %7, %cst_12 {dimension_numbers = #tpu.dot_dimension_numbers<[1], [0], [0], [1], [0, 0, 1, 1], [], []>} : vector<16x32xf32>, vector<32x32xf32>, vector<16x32xf32> -> vector<16x32xf32>
    %16 = vector.shape_cast %14 : vector<16x32xf32> to vector<2x8x32xf32>
    %17 = vector.shape_cast %15 : vector<16x32xf32> to vector<2x8x32xf32>
    %cst_13 = arith.constant dense<0.000000e+00> : vector<2x8x8xf32>
    %18 = tpu.matmul %17, %16, %cst_13 {dimension_numbers = #tpu.dot_dimension_numbers<[2], [2], [1], [1], [0, 0, 0, 1, 1, 1], [0], [0]>} : vector<2x8x32xf32>, vector<2x8x32xf32>, vector<2x8x8xf32> -> vector<2x8x8xf32>
    %cst_14 = arith.constant 0.000000e+00 : f32
    %19 = vector.broadcast %cst_14 : f32 to vector<2x1x8xf32>
    %20 = arith.cmpf oeq, %2, %19 : vector<2x1x8xf32>
    %cst_15 = arith.constant -1.000000e+04 : f32
    %21 = vector.shape_cast %20 : vector<2x1x8xi1> to vector<2x1x8xi1>
    %22 = vector.broadcast %21 : vector<2x1x8xi1> to vector<2x8x8xi1>
    %23 = vector.broadcast %cst_15 : f32 to vector<2x8x8xf32>
    %24 = arith.select %22, %23, %18 : vector<2x8x8xi1>, vector<2x8x8xf32>
    %cst_16 = arith.constant dense<0xFF800000> : vector<2x8xf32>
    %25 = vector.multi_reduction <maximumf>, %24, %cst_16 [2] : vector<2x8x8xf32> to vector<2x8xf32>
    %26 = vector.shape_cast %25 : vector<2x8xf32> to vector<2x8x1xf32>
    %27 = vector.broadcast %26 : vector<2x8x1xf32> to vector<2x8x8xf32>
    %28 = arith.cmpf oeq, %24, %27 : vector<2x8x8xf32>
    %cst_17 = arith.constant 1.000000e+00 : f32
    %cst_18 = arith.constant 0.000000e+00 : f32
    %29 = vector.broadcast %cst_17 : f32 to vector<2x8x8xf32>
    %30 = vector.broadcast %cst_18 : f32 to vector<2x8x8xf32>
    %31 = arith.select %28, %29, %30 : vector<2x8x8xi1>, vector<2x8x8xf32>
    %32 = vector.broadcast %26 : vector<2x8x1xf32> to vector<2x8x8xf32>
    %33 = arith.subf %24, %32 : vector<2x8x8xf32>
    %34 = math.exp %33 : vector<2x8x8xf32>
    %cst_19 = arith.constant dense<0.000000e+00> : vector<2x8xf32>
    %35 = vector.multi_reduction <add>, %34, %cst_19 [2] : vector<2x8x8xf32> to vector<2x8xf32>
    %36 = vector.shape_cast %35 : vector<2x8xf32> to vector<2x8x1xf32>
    %37 = vector.broadcast %36 : vector<2x8x1xf32> to vector<2x8x8xf32>
    %38 = arith.divf %34, %37 : vector<2x8x8xf32>
    %cst_20 = arith.constant dense<0.000000e+00> : vector<2x8x32xf32>
    %39 = tpu.matmul %38, %16, %cst_20 {dimension_numbers = #tpu.dot_dimension_numbers<[2], [1], [1], [2], [0, 0, 0, 1, 1, 2], [0], [0]>} : vector<2x8x8xf32>, vector<2x8x32xf32>, vector<2x8x32xf32> -> vector<2x8x32xf32>
    %cst_21 = arith.constant dense<0.000000e+00> : vector<2x8x32xf32>
    %40 = tpu.matmul %31, %16, %cst_21 {dimension_numbers = #tpu.dot_dimension_numbers<[2], [1], [1], [2], [0, 0, 0, 1, 1, 2], [0], [0]>} : vector<2x8x8xf32>, vector<2x8x32xf32>, vector<2x8x32xf32> -> vector<2x8x32xf32>
    %41 = vector.shape_cast %39 : vector<2x8x32xf32> to vector<16x32xf32>
    %42 = vector.shape_cast %40 : vector<2x8x32xf32> to vector<16x32xf32>
    %43 = tpu.concatenate %14, %41, %42 in 1 : vector<16x32xf32>, vector<16x32xf32>, vector<16x32xf32> -> vector<16x96xf32>
    %cst_22 = arith.constant dense<0.000000e+00> : vector<16x32xf32>
    %44 = tpu.matmul %43, %8, %cst_22 {dimension_numbers = #tpu.dot_dimension_numbers<[1], [0], [0], [1], [0, 0, 1, 1], [], []>} : vector<16x96xf32>, vector<96x32xf32>, vector<16x32xf32> -> vector<16x32xf32>
    %45 = vector.broadcast %5 : vector<1x32xf32> to vector<16x32xf32>
    %46 = arith.addf %44, %45 : vector<16x32xf32>
    %cst_23 = arith.constant 0.000000e+00 : f32
    %47 = vector.broadcast %cst_23 : f32 to vector<16x32xf32>
    %48 = arith.maximumf %46, %47 : vector<16x32xf32>
    %c0_24 = arith.constant 0 : index
    %c0_25 = arith.constant 0 : index
    %49 = vector.load %arg6[%c0_24, %c0_25] : memref<32x128xf32, #tpu.memory_space<vmem>>, vector<32x128xf32>
    %cst_26 = arith.constant dense<0.000000e+00> : vector<16x128xf32>
    %50 = tpu.matmul %48, %49, %cst_26 {dimension_numbers = #tpu.dot_dimension_numbers<[1], [0], [0], [1], [0, 0, 1, 1], [], []>} : vector<16x32xf32>, vector<32x128xf32>, vector<16x128xf32> -> vector<16x128xf32>
    %c0_27 = arith.constant 0 : index
    %c0_28 = arith.constant 0 : index
    %51 = vector.load %arg7[%c0_27, %c0_28] : memref<1x128xf32, #tpu.memory_space<vmem>>, vector<1x128xf32>
    %52 = vector.broadcast %51 : vector<1x128xf32> to vector<16x128xf32>
    %53 = arith.addf %50, %52 : vector<16x128xf32>
    %cst_29 = arith.constant dense<0xFF800000> : vector<16xf32>
    %54 = vector.multi_reduction <maximumf>, %53, %cst_29 [1] : vector<16x128xf32> to vector<16xf32>
    %55 = vector.shape_cast %54 : vector<16xf32> to vector<16x1xf32>
    %56 = vector.broadcast %55 : vector<16x1xf32> to vector<16x128xf32>
    %57 = arith.subf %53, %56 : vector<16x128xf32>
    %58 = math.exp %57 : vector<16x128xf32>
    %cst_30 = arith.constant dense<0.000000e+00> : vector<16xf32>
    %59 = vector.multi_reduction <add>, %58, %cst_30 [1] : vector<16x128xf32> to vector<16xf32>
    %60 = vector.shape_cast %59 : vector<16xf32> to vector<16x1xf32>
    %61 = math.log %60 : vector<16x1xf32>
    %62 = arith.addf %61, %55 : vector<16x1xf32>
    %63 = vector.broadcast %62 : vector<16x1xf32> to vector<16x128xf32>
    %64 = arith.subf %53, %63 : vector<16x128xf32>
    %65 = vector.shape_cast %64 : vector<16x128xf32> to vector<2x8x128xf32>
    %c0_31 = arith.constant 0 : index
    %c0_32 = arith.constant 0 : index
    %c0_33 = arith.constant 0 : index
    %66 = vector.load %arg8[%c0_31, %c0_32, %c0_33] : memref<2x8x128xf32, #tpu.memory_space<vmem>>, vector<2x8x128xf32>
    tpu.vector_store %arg8[%c0_31, %c0_32, %c0_33], %65 {strides = array<i32>} : memref<2x8x128xf32, #tpu.memory_space<vmem>>, vector<2x8x128xf32>,
    return
  }
  func.func @transform_0(%arg0: i32) -> (i32, i32, i32) {
    %c0_i32 = arith.constant 0 : i32
    %c0_i32_0 = arith.constant 0 : i32
    %c0_i32_1 = arith.constant 0 : i32
    return %arg0, %c0_i32, %c0_i32_0 : i32, i32, i32
  }
  func.func @transform_1(%arg0: i32) -> (i32, i32, i32) {
    %c0_i32 = arith.constant 0 : i32
    %c0_i32_0 = arith.constant 0 : i32
    %c0_i32_1 = arith.constant 0 : i32
    return %arg0, %c0_i32, %c0_i32_0 : i32, i32, i32
  }
  func.func @transform_2(%arg0: i32) -> (i32, i32) {
    %c0_i32 = arith.constant 0 : i32
    %c0_i32_0 = arith.constant 0 : i32
    %c0_i32_1 = arith.constant 0 : i32
    return %c0_i32, %c0_i32_0 : i32, i32
  }
  func.func @transform_3(%arg0: i32) -> (i32, i32) {
    %c0_i32 = arith.constant 0 : i32
    %c0_i32_0 = arith.constant 0 : i32
    %c0_i32_1 = arith.constant 0 : i32
    return %c0_i32, %c0_i32_0 : i32, i32
  }
  func.func @transform_4(%arg0: i32) -> (i32, i32) {
    %c0_i32 = arith.constant 0 : i32
    %c0_i32_0 = arith.constant 0 : i32
    %c0_i32_1 = arith.constant 0 : i32
    return %c0_i32, %c0_i32_0 : i32, i32
  }
  func.func @transform_5(%arg0: i32) -> (i32, i32) {
    %c0_i32 = arith.constant 0 : i32
    %c0_i32_0 = arith.constant 0 : i32
    %c0_i32_1 = arith.constant 0 : i32
    return %c0_i32, %c0_i32_0 : i32, i32
  }
  func.func @transform_6(%arg0: i32) -> (i32, i32) {
    %c0_i32 = arith.constant 0 : i32
    %c0_i32_0 = arith.constant 0 : i32
    %c0_i32_1 = arith.constant 0 : i32
    return %c0_i32, %c0_i32_0 : i32, i32
  }
  func.func @transform_7(%arg0: i32) -> (i32, i32, i32) {
    %c0_i32 = arith.constant 0 : i32
    %c0_i32_0 = arith.constant 0 : i32
    %c0_i32_1 = arith.constant 0 : i32
    return %arg0, %c0_i32, %c0_i32_0 : i32, i32, i32
  }
}

</mosaic_0001>

<bundles_post_ra>
// kernel: tpu_custom_call.1
= control target key start
LH: loop header
LB: loop body
LE: loop exit
PB: predicated region body
PF: predicated region fallthrough
CT: control target
= control target key end

     0   :  { %s2135_s0 = inlined_call_operand.vmem [shape: f32[2,8,768], index: 0, kind: input, shape index: {}]   ;;  %s2136_s1 = inlined_call_operand.vmem [shape: f32[2,1,8], index: 1, kind: input, shape index: {}]   ;;  %s2137_s2 = inlined_call_operand.vmem [shape: f32[768,32], index: 2, kind: input, shape index: {}]   ;;  %s2138_s3 = inlined_call_operand.vmem [shape: f32[2,32], index: 3, kind: input, shape index: {}]   ;;  %s2139_s4 = inlined_call_operand.vmem [shape: f32[128,32], index: 4, kind: input, shape index: {}]   ;;  %s2140_s5 = inlined_call_operand.vmem [shape: f32[32,128], index: 5, kind: input, shape index: {}]   ;;  %s2141_s6 = inlined_call_operand.vmem [shape: f32[1,128], index: 6, kind: input, shape index: {}]   ;;  %s2142_s7 = inlined_call_operand.hbm [shape: f32[2,8,128], index: 7, kind: output, shape index: {}]  }
   0x1   :  { %v74_v0 = vld [vmem:[%s2137_s2 + $0x80] sm:$0xff]  ;;  %v75_v1 = vld [vmem:[%s2137_s2 + $0x88] sm:$0xff]  ;;  %v76_v11 = vld [vmem:[%s2137_s2 + $0x90] sm:$0xff] }
   0x2   :  { %v58_v2 = vld [vmem:[%s2137_s2] sm:$0xff]  ;;  %v1435_v3 = vpack.c.bf16 %v75_v1, %v74_v0  ;;  %v59_v4 = vld [vmem:[%s2137_s2 + $0x8] sm:$0xff]  ;;  %v77_v13 = vld [vmem:[%s2137_s2 + $0x98] sm:$0xff] }
   0x3   :  { %v106_v5 = vld [vmem:[%s2137_s2 + $0x180] sm:$0xff]  ;;  %v107_v6 = vld [vmem:[%s2137_s2 + $0x188] sm:$0xff]  ;;  %v1437_v7 = vpack.c.bf16 %v59_v4, %v58_v2  ;;  %v60_v14 = vld [vmem:[%s2137_s2 + $0x10] sm:$0xff]  ;;  %v1439_v16 = vpack.c.bf16 %v77_v13, %v76_v11 }
   0x4   :  { %v1467_v8 = vpack.c.bf16 %v107_v6, %v106_v5  ;;  %v90_v9 = vld [vmem:[%s2137_s2 + $0x100] sm:$0xff]  ;;  %v91_v10 = vld [vmem:[%s2137_s2 + $0x108] sm:$0xff]  ;;  %1436 = vmatprep.subr.bf16.mxu0 %v1435_v3  ;;  %v61_v15 = vld [vmem:[%s2137_s2 + $0x18] sm:$0xff] }
   0x5   :  { %v1469_v12 = vpack.c.bf16 %v91_v10, %v90_v9  ;;  %1438 = vmatpush3.bf16.msra.mxu0 %v1437_v7  ;;  %v1441_v17 = vpack.c.bf16 %v61_v15, %v60_v14  ;;  %v108_v18 = vld [vmem:[%s2137_s2 + $0x190] sm:$0xff]  ;;  %v109_v19 = vld [vmem:[%s2137_s2 + $0x198] sm:$0xff]  ;;  %v78_v23 = vld [vmem:[%s2137_s2 + $0xa0] sm:$0xff] }
   0x6   :  { %1468 = vmatprep.subr.bf16.mxu1 %v1467_v8  ;;  %v92_v20 = vld [vmem:[%s2137_s2 + $0x110] sm:$0xff]  ;;  %v1471_v21 = vpack.c.bf16 %v109_v19, %v108_v18  ;;  %v93_v22 = vld [vmem:[%s2137_s2 + $0x118] sm:$0xff]  ;;  %v79_v24 = vld [vmem:[%s2137_s2 + $0xa8] sm:$0xff]  ;;  %1440 = vmatprep.subr.bf16.mxu0 %v1439_v16 }
   0x7   :  { %1470 = vmatpush3.bf16.msra.mxu1 %v1469_v12  ;;  %v1473_v25 = vpack.c.bf16 %v93_v22, %v92_v20  ;;  %v1443_v26 = vpack.c.bf16 %v79_v24, %v78_v23  ;;  %v62_v27 = vld [vmem:[%s2137_s2 + $0x20] sm:$0xff]  ;;  %v63_v28 = vld [vmem:[%s2137_s2 + $0x28] sm:$0xff]  ;;  %v80_v35 = vld [vmem:[%s2137_s2 + $0xb0] sm:$0xff] }
   0x8   :  { %v110_v29 = vld [vmem:[%s2137_s2 + $0x1a0] sm:$0xff]  ;;  %1472 = vmatprep.subr.bf16.mxu1 %v1471_v21  ;;  %v111_v30 = vld [vmem:[%s2137_s2 + $0x1a8] sm:$0xff]  ;;  %v1445_v33 = vpack.c.bf16 %v63_v28, %v62_v27  ;;  %v81_v36 = vld [vmem:[%s2137_s2 + $0xb8] sm:$0xff] }
   0x9   :  { %v94_v31 = vld [vmem:[%s2137_s2 + $0x120] sm:$0xff]  ;;  %v95_v32 = vld [vmem:[%s2137_s2 + $0x128] sm:$0xff]  ;;  %1442 = vmatpush3.bf16.msra.mxu0 %v1441_v17  ;;  %v1475_v34 = vpack.c.bf16 %v111_v30, %v110_v29  ;;  %v64_v37 = vld [vmem:[%s2137_s2 + $0x30] sm:$0xff]  ;;  %v1447_v39 = vpack.c.bf16 %v81_v36, %v80_v35 }
   0xa   :  { %1444 = vmatprep.subr.bf16.mxu0 %v1443_v26  ;;  %v1477_v38 = vpack.c.bf16 %v95_v32, %v94_v31  ;;  %v65_v40 = vld [vmem:[%s2137_s2 + $0x38] sm:$0xff]  ;;  %v112_v41 = vld [vmem:[%s2137_s2 + $0x1b0] sm:$0xff]  ;;  %v82_v46 = vld [vmem:[%s2137_s2 + $0xc0] sm:$0xff] }
   0xb   :  { %1474 = vmatpush3.bf16.msra.mxu1 %v1473_v25  ;;  %v113_v42 = vld [vmem:[%s2137_s2 + $0x1b8] sm:$0xff]  ;;  %v96_v44 = vld [vmem:[%s2137_s2 + $0x130] sm:$0xff]  ;;  %v83_v47 = vld [vmem:[%s2137_s2 + $0xc8] sm:$0xff]  ;;  %v1449_v48 = vpack.c.bf16 %v65_v40, %v64_v37 }
   0xc   :  { %1476 = vmatprep.subr.bf16.mxu1 %v1475_v34  ;;  %v1479_v43 = vpack.c.bf16 %v113_v42, %v112_v41  ;;  %v97_v45 = vld [vmem:[%s2137_s2 + $0x138] sm:$0xff]  ;;  %v114_v49 = vld [vmem:[%s2137_s2 + $0x1c0] sm:$0xff]  ;;  %v115_v50 = vld [vmem:[%s2137_s2 + $0x1c8] sm:$0xff]  ;;  %v1451_v52 = vpack.c.bf16 %v83_v47, %v82_v46 }
   0xd   :  { %1446 = vmatpush3.bf16.msra.mxu0 %v1445_v33  ;;  %v1481_v51 = vpack.c.bf16 %v97_v45, %v96_v44  ;;  %v66_v53 = vld [vmem:[%s2137_s2 + $0x40] sm:$0xff]  ;;  %v67_v54 = vld [vmem:[%s2137_s2 + $0x48] sm:$0xff]  ;;  %v1483_v56 = vpack.c.bf16 %v115_v50, %v114_v49  ;;  %v84_v58 = vld [vmem:[%s2137_s2 + $0xd0] sm:$0xff] }
   0xe   :  { %1448 = vmatprep.subr.bf16.mxu0 %v1447_v39  ;;  %v98_v55 = vld [vmem:[%s2137_s2 + $0x140] sm:$0xff]  ;;  %v99_v57 = vld [vmem:[%s2137_s2 + $0x148] sm:$0xff]  ;;  %v85_v59 = vld [vmem:[%s2137_s2 + $0xd8] sm:$0xff]  ;;  %v1453_v62 = vpack.c.bf16 %v67_v54, %v66_v53 }
   0xf   :  { %1478 = vmatpush3.bf16.msra.mxu1 %v1477_v38  ;;  %v116_v60 = vld [vmem:[%s2137_s2 + $0x1d0] sm:$0xff]  ;;  %v117_v61 = vld [vmem:[%s2137_s2 + $0x1d8] sm:$0xff]  ;;  %v1485_v63 = vpack.c.bf16 %v99_v57, %v98_v55  ;;  %v1455_v0 = vpack.c.bf16 %v85_v59, %v84_v58  ;;  %v86_v6 = vld [vmem:[%s2137_s2 + $0xe0] sm:$0xff] }
  0x10   :  { %1480 = vmatprep.subr.bf16.mxu1 %v1479_v43  ;;  %v68_v1 = vld [vmem:[%s2137_s2 + $0x50] sm:$0xff]  ;;  %v69_v2 = vld [vmem:[%s2137_s2 + $0x58] sm:$0xff]  ;;  %v1487_v4 = vpack.c.bf16 %v117_v61, %v116_v60  ;;  %v87_v7 = vld [vmem:[%s2137_s2 + $0xe8] sm:$0xff] }
  0x11   :  { %1450 = vmatpush3.bf16.msra.mxu0 %v1449_v48  ;;  %v100_v3 = vld [vmem:[%s2137_s2 + $0x150] sm:$0xff]  ;;  %v101_v5 = vld [vmem:[%s2137_s2 + $0x158] sm:$0xff]  ;;  %v118_v8 = vld [vmem:[%s2137_s2 + $0x1e0] sm:$0xff]  ;;  %v1457_v10 = vpack.c.bf16 %v69_v2, %v68_v1  ;;  %v1459_v14 = vpack.c.bf16 %v87_v7, %v86_v6 }
  0x12   :  { %1452 = vmatprep.subr.bf16.mxu0 %v1451_v52  ;;  %v119_v9 = vld [vmem:[%s2137_s2 + $0x1e8] sm:$0xff]  ;;  %v70_v11 = vld [vmem:[%s2137_s2 + $0x60] sm:$0xff]  ;;  %v1489_v13 = vpack.c.bf16 %v101_v5, %v100_v3  ;;  %v88_v19 = vld [vmem:[%s2137_s2 + $0xf0] sm:$0xff] }
  0x13   :  { %1482 = vmatpush3.bf16.msra.mxu1 %v1481_v51  ;;  %v28_v12 = vld [vmem:[%s2135_s0 + $0x8] sm:$0xff]  ;;  %v102_v16 = vld [vmem:[%s2137_s2 + $0x160] sm:$0xff]  ;;  %v1491_v18 = vpack.c.bf16 %v119_v9, %v118_v8  ;;  %v89_v20 = vld [vmem:[%s2137_s2 + $0xf8] sm:$0xff] }
  0x14   :  { %1484 = vmatprep.subr.bf16.mxu1 %v1483_v56  ;;  %v71_v15 = vld [vmem:[%s2137_s2 + $0x68] sm:$0xff]  ;;  %222 = vmatprep.mubr.f32.mxu0 %v28_v12  ;;  %v30_v21 = vld [vmem:[%s2135_s0 + $0x18] sm:$0xff]  ;;  %v120_v22 = vld [vmem:[%s2137_s2 + $0x1f0] sm:$0xff]  ;;  %v1463_v26 = vpack.c.bf16 %v89_v20, %v88_v19 }
  0x15   :  { %1454 = vmatpush3.bf16.msra.mxu0 %v1453_v62  ;;  %v103_v17 = vld [vmem:[%s2137_s2 + $0x168] sm:$0xff]  ;;  %v121_v23 = vld [vmem:[%s2137_s2 + $0x1f8] sm:$0xff]  ;;  %297 = vmatprep.mubr.f32.mxu1 %v30_v21  ;;  %v1461_v24 = vpack.c.bf16 %v71_v15, %v70_v11  ;;  %v72_v27 = vld [vmem:[%s2137_s2 + $0x70] sm:$0xff] }
  0x16   :  { %1456 = vmatprep.subr.bf16.mxu0 %v1455_v0  ;;  %v1493_v25 = vpack.c.bf16 %v103_v17, %v102_v16  ;;  %v73_v28 = vld [vmem:[%s2137_s2 + $0x78] sm:$0xff]  ;;  %v104_v29 = vld [vmem:[%s2137_s2 + $0x170] sm:$0xff]  ;;  %v1495_v30 = vpack.c.bf16 %v121_v23, %v120_v22  ;;  %v138_v32 = vld [vmem:[%s2137_s2 + $0x280] sm:$0xff] }
  0x17   :  { %1486 = vmatpush3.bf16.msra.mxu1 %v1485_v63  ;;  %v105_v31 = vld [vmem:[%s2137_s2 + $0x178] sm:$0xff]  ;;  %v139_v33 = vld [vmem:[%s2137_s2 + $0x288] sm:$0xff]  ;;  %v1465_v34 = vpack.c.bf16 %v73_v28, %v72_v27  ;;  %v122_v37 = vld [vmem:[%s2137_s2 + $0x200] sm:$0xff] }
  0x18   :  { %1488 = vmatprep.subr.bf16.mxu1 %v1487_v4  ;;  %v1497_v35 = vpack.c.bf16 %v105_v31, %v104_v29  ;;  %v1499_v36 = vpack.c.bf16 %v139_v33, %v138_v32  ;;  %v123_v38 = vld [vmem:[%s2137_s2 + $0x208] sm:$0xff]  ;;  %v140_v39 = vld [vmem:[%s2137_s2 + $0x290] sm:$0xff]  ;;  %v141_v40 = vld [vmem:[%s2137_s2 + $0x298] sm:$0xff] }
  0x19   :  { %1458 = vmatpush3.bf16.msra.mxu0 %v1457_v10  ;;  %v27_v41 = vld [vmem:[%s2135_s0] sm:$0xff]  ;;  %v1501_v42 = vpack.c.bf16 %v123_v38, %v122_v37  ;;  %v29_v43 = vld [vmem:[%s2135_s0 + $0x10] sm:$0xff]  ;;  %v1503_v44 = vpack.c.bf16 %v141_v40, %v140_v39  ;;  %v125_v46 = vld [vmem:[%s2137_s2 + $0x218] sm:$0xff] }
  0x1a   :  { %1460 = vmatprep.subr.bf16.mxu0 %v1459_v14  ;;  %v124_v45 = vld [vmem:[%s2137_s2 + $0x210] sm:$0xff]  ;;  %v142_v47 = vld [vmem:[%s2137_s2 + $0x2a0] sm:$0xff]  ;;  %v143_v48 = vld [vmem:[%s2137_s2 + $0x2a8] sm:$0xff] }
  0x1b   :  { %1490 = vmatpush3.bf16.msra.mxu1 %v1489_v13  ;;  %v34_v49 = vld [vmem:[%s2135_s0 + $0x38] sm:$0xff]  ;;  %v36_v50 = vld [vmem:[%s2135_s0 + $0x48] sm:$0xff]  ;;  %v1505_v51 = vpack.c.bf16 %v125_v46, %v124_v45  ;;  %v33_v52 = vld [vmem:[%s2135_s0 + $0x30] sm:$0xff] }
  0x1c   :  { %1492 = vmatprep.subr.bf16.mxu1 %v1491_v18 }
  0x1d   :  { %1462 = vmatpush3.bf16.msra.mxu0 %v1461_v24 }
  0x1e   :  { %1464 = vmatprep.subr.bf16.mxu0 %v1463_v26 }
  0x1f   :  { %1494 = vmatpush3.bf16.msra.mxu1 %v1493_v25 }
  0x20   :  { %1496 = vmatprep.subr.bf16.mxu1 %v1495_v30 }
  0x21   :  { %1466 = vmatpush3.bf16.msra.mxu0 %v1465_v34 }
  0x22   :  { %1500 = vmatprep.subr.bf16.mxu0 %v1499_v36 }
  0x23   :  { %1498 = vmatpush3.bf16.msra.mxu1 %v1497_v35 }
  0x24   :  { %223 = vmatmul.mubr.f32.vlgmr.msra.gmra.mrb[0].mxu0 %v27_v41 }
  0x25   :  { %1502 = vmatpush3.bf16.msra.mxu0 %v1501_v42 }
  0x26   :  { %298 = vmatmul.mubr.f32.vlgmr.msra.gmra.mrb[0].mxu1 %v29_v43 }
  0x27   :  { %12 = vsyncpa [#allocation3], 0  ;;  %1504 = vmatprep.subr.bf16.mxu0 %v1503_v44  ;;  %v1507_v53 = vpack.c.bf16 %v143_v48, %v142_v47  ;;  %v126_v54 = vld [vmem:[%s2137_s2 + $0x220] sm:$0xff]  ;;  %v127_v55 = vld [vmem:[%s2137_s2 + $0x228] sm:$0xff]  ;;  %227 = vmatprep.mubr.f32.mxu0 %v34_v49  ;;  %v1619_v34 = vmov 0.0   ;;  %v154_v35 = vlaneseq  ;;  %vm385_vm0 = vcmask 261120  }
  0x28   :  { %v35_v56 = vld [vmem:[%s2135_s0 + $0x40] sm:$0xff]  ;;  %v144_v57 = vld [vmem:[%s2137_s2 + $0x2b0] sm:$0xff]  ;;  %v145_v58 = vld [vmem:[%s2137_s2 + $0x2b8] sm:$0xff]  ;;  %302 = vmatprep.mubr.f32.mxu1 %v36_v50  ;;  %228 = vmatmul.mubr.f32.gmra.mrb[2].mxu0 %v33_v52  ;;  %v1509_v60 = vpack.c.bf16 %v127_v55, %v126_v54  ;;  %vm1620_vm1 = vmmov 0   ;;  %vm629_vm5 = vcmask 64512   ;;  %s1622_s18 = smov 32  }
  0x29   :  { %v32_v59 = vld [vmem:[%s2135_s0 + $0x28] sm:$0xff]  ;;  %1506 = vmatpush3.bf16.msra.mxu0 %v1505_v51  ;;  %v1511_v61 = vpack.c.bf16 %v145_v58, %v144_v57  ;;  %v128_v62 = vld [vmem:[%s2137_s2 + $0x230] sm:$0xff]  ;;  %v129_v63 = vld [vmem:[%s2137_s2 + $0x238] sm:$0xff]  ;;  %v2004_v36 = vshrl.u32 %v154_v35, 7  ;;  %vm966_vm9 = vcmask 523264   ;;  %vm973_vm10 = vcmask 785408  }
  0x2a   :  { %303 = vmatmul.mubr.f32.gmra.mrb[2].mxu1 %v35_v56  ;;  %1508 = vmatprep.subr.bf16.mxu0 %v1507_v53  ;;  %v146_v0 = vld [vmem:[%s2137_s2 + $0x2c0] sm:$0xff]  ;;  %v147_v1 = vld [vmem:[%s2137_s2 + $0x2c8] sm:$0xff]  ;;  %v1513_v2 = vpack.c.bf16 %v129_v63, %v128_v62  ;;  %v148_v6 = vld [vmem:[%s2137_s2 + $0x2d0] sm:$0xff] }
  0x2b   :  { %372 = vmatprep.mubr.f32.mxu0 %v32_v59  ;;  %v1515_v3 = vpack.c.bf16 %v147_v1, %v146_v0  ;;  %v130_v4 = vld [vmem:[%s2137_s2 + $0x240] sm:$0xff]  ;;  %v131_v5 = vld [vmem:[%s2137_s2 + $0x248] sm:$0xff]  ;;  %v149_v7 = vld [vmem:[%s2137_s2 + $0x2d8] sm:$0xff]  ;;  %v156_v37 = vsub.s32 0, %v2004_v36 }
  0x2c   :  { %v1517_v8 = vpack.c.bf16 %v131_v5, %v130_v4  ;;  %v1519_v9 = vpack.c.bf16 %v149_v7, %v148_v6  ;;  %v132_v10 = vld [vmem:[%s2137_s2 + $0x250] sm:$0xff]  ;;  %v133_v11 = vld [vmem:[%s2137_s2 + $0x258] sm:$0xff]  ;;  %v150_v12 = vld [vmem:[%s2137_s2 + $0x2e0] sm:$0xff]  ;;  %v1621_v6 = vmov 0  }
  0x2d   :  { %1510 = vmatpush3.bf16.msra.mxu0 %v1509_v60  ;;  %v151_v13 = vld [vmem:[%s2137_s2 + $0x2e8] sm:$0xff]  ;;  %v1521_v14 = vpack.c.bf16 %v133_v11, %v132_v10  ;;  %v134_v16 = vld [vmem:[%s2137_s2 + $0x260] sm:$0xff]  ;;  %v152_v18 = vld [vmem:[%s2137_s2 + $0x2f0] sm:$0xff] }
  0x2e   :  { %1512 = vmatprep.subr.bf16.mxu0 %v1511_v61  ;;  %v1523_v15 = vpack.c.bf16 %v151_v13, %v150_v12  ;;  %v135_v17 = vld [vmem:[%s2137_s2 + $0x268] sm:$0xff]  ;;  %v153_v19 = vld [vmem:[%s2137_s2 + $0x2f8] sm:$0xff]  ;;  %v136_v22 = vld [vmem:[%s2137_s2 + $0x270] sm:$0xff] }
  0x2f   :  { %v1525_v20 = vpack.c.bf16 %v135_v17, %v134_v16  ;;  %v1527_v21 = vpack.c.bf16 %v153_v19, %v152_v18  ;;  %v137_v23 = vld [vmem:[%s2137_s2 + $0x278] sm:$0xff]  ;;  %v31_v25 = vld [vmem:[%s2135_s0 + $0x20] sm:$0xff]  ;;  %v37_v27 = vld [vmem:[%s2135_s0 + $0x50] sm:$0xff] }
  0x30   :  { %v1529_v24 = vpack.c.bf16 %v137_v23, %v136_v22  ;;  %v38_v26 = vld [vmem:[%s2135_s0 + $0x58] sm:$0xff]  ;;  %v42_v28 = vld [vmem:[%s2139_s4] sm:$0xff]  ;;  %v43_v29 = vld [vmem:[%s2139_s4 + $0x8] sm:$0xff] }
  0x31   :  { %1514 = vmatpush3.bf16.msra.mxu0 %v1513_v2  ;;  %v1531_v30 = vpack.c.bf16 %v43_v29, %v42_v28  ;;  %v44_v31 = vld [vmem:[%s2139_s4 + $0x10] sm:$0xff]  ;;  %v45_v32 = vld [vmem:[%s2139_s4 + $0x18] sm:$0xff]  ;;  %v2010_v38 = vld [vmem:[%s2138_s3] sm:$0x3] }
  0x32   :  { %1516 = vmatprep.subr.bf16.mxu0 %v1515_v3  ;;  %v1535_v33 = vpack.c.bf16 %v45_v32, %v44_v31  ;;  %v157_v40 = vrot.slane %v2010_v38, %v156_v37  ;;  %v39_v4 = vld [vmem:[%s2136_s1] sm:$0x1]  ;;  %v40_v5 = vld [vmem:[%s2136_s1 + $0x1] sm:$0x1] }
  0x33   :  { %1532 = vmatprep.subr.bf16.mxu1 %v1531_v30  ;;  %vm613_vm2 = vcmp.eq.f32.partialorder %v39_v4, 0.0  ;;  %vm614_vm3 = vcmp.eq.f32.partialorder %v40_v5, 0.0 }
  0x34   :  { %1534 = vmatpush3.bf16.msra.mxu1 %v1531_v30  ;;  %v615_v7 = vsel %vm613_vm2, 1, %v1621_v6 }
  0x35   :  { %1518 = vmatpush3.bf16.msra.mxu0 %v1517_v8  ;;  %1536 = vmatprep.subr.bf16.mxu1 %v1535_v33  ;;  %v620_v8 = vrot.slane %v615_v7, %v156_v37 }
  0x36   :  { %1520 = vmatprep.subr.bf16.mxu0 %v1519_v9  ;;  %v616_v9 = vsel %vm614_vm3, 1, %v1621_v6 }
  0x37   :  { %vm625_vm4 = vcmp.eq.s32.totalorder %v620_v8, 1  ;;  %v624_v10 = vrot.slane %v616_v9, %v156_v37 }
  0x38   :  { %1538 = vmatpush3.bf16.msra.mxu1 %v1535_v33 }
  0x39   :  { %1522 = vmatpush3.bf16.msra.mxu0 %v1521_v14  ;;  %1367 = vmatprep.subr.mxu1 %v1619_v34  ;;  %vm626_vm6 = vcmp.eq.s32.totalorder %v624_v10, 1 }
  0x3a   :  { %1524 = vmatprep.subr.bf16.mxu0 %v1523_v15 }
  0x3d   :  { %1526 = vmatpush3.bf16.msra.mxu0 %v1525_v20 }
  0x3e   :  { %1528 = vmatprep.subr.bf16.mxu0 %v1527_v21 }
  0x41   :  { %1530 = vmatpush3.bf16.msra.mxu0 %v1529_v24 }
  0x44   :  { %373 = vmatmul.mubr.f32.vlgmr.msra.gmra.mrb[4].mxu0 %v31_v25 }
  0x45   :  { %377 = vmatprep.mubr.f32.mxu0 %v38_v26 }
  0x48   :  { %378 = vmatmul.mubr.f32.gmra.mrb[6].mxu0 %v37_v27 }
  0xf7   :  { %v1236_v39 = vpop.f32.mrb[0].mxu0 }
  0xf8   :  { %v1237_v41 = vpop.f32.mrb[1].mxu0 }
  0xf9   :  { %v1274_v42 = vpop.f32.mrb[0].mxu1  ;;  %v1238_v43 = vadd.f32 %v1237_v41, %v1236_v39  ;;  %v47_v41 = vld [vmem:[%s2139_s4 + $0x28] sm:$0xff] }
  0xfa   :  { %v1275_v44 = vpop.f32.mrb[1].mxu1 }
  0xfb   :  { %v1276_v45 = vadd.f32 %v1275_v44, %v1274_v42  ;;  %v225_v46 = vadd.f32 %v1238_v43, %v157_v40  ;;  %v1239_v47 = vpop.f32.mrb[2].mxu0  ;;  %v48_v42 = vld [vmem:[%s2139_s4 + $0x30] sm:$0xff]  ;;  %v49_v44 = vld [vmem:[%s2139_s4 + $0x38] sm:$0xff] }
  0xfc   :  { %v1240_v48 = vpop.f32.mrb[3].mxu0 }
  0xfd   :  { %v1277_v49 = vpop.f32.mrb[2].mxu1  ;;  %v300_v50 = vadd.f32 %v1276_v45, %v225_v46  ;;  %v1241_v51 = vadd.f32 %v1240_v48, %v1239_v47  ;;  %v50_v45 = vld [vmem:[%s2139_s4 + $0x40] sm:$0xff]  ;;  %v51_v46 = vld [vmem:[%s2139_s4 + $0x48] sm:$0xff]  ;;  %v52_v48 = vld [vmem:[%s2139_s4 + $0x50] sm:$0xff] }
  0xfe   :  { %v1278_v52 = vpop.f32.mrb[3].mxu1  ;;  %v1547_v47 = vpack.c.bf16 %v51_v46, %v50_v45 }
  0xff   :  { %v1279_v53 = vadd.f32 %v1278_v52, %v1277_v49  ;;  %v230_v54 = vadd.f32 %v1241_v51, %v157_v40  ;;  %v46_v40 = vld [vmem:[%s2139_s4 + $0x20] sm:$0xff]  ;;  %v53_v49 = vld [vmem:[%s2139_s4 + $0x58] sm:$0xff]  ;;  %v55_v52 = vld [vmem:[%s2139_s4 + $0x68] sm:$0xff] }
 0x100   :  { %v1539_v43 = vpack.c.bf16 %v47_v41, %v46_v40  ;;  %v54_v51 = vld [vmem:[%s2139_s4 + $0x60] sm:$0xff] }
 0x101   :  { %v305_v55 = vadd.f32 %v1279_v53, %v230_v54  ;;  %v1555_v53 = vpack.c.bf16 %v55_v52, %v54_v51  ;;  %v56_v54 = vld [vmem:[%s2139_s4 + $0x70] sm:$0xff] }
 0x102   :  { %1540 = vmatprep.subr.bf16.mxu0 %v1539_v43 }
 0x103   :  { %1542 = vmatpush3.bf16.msra.mxu0 %v1539_v43 }
 0x117   :  { %v1312_v56 = vpop.f32.mrb[4].mxu0 }
 0x118   :  { %v1313_v57 = vpop.f32.mrb[5].mxu0 }
 0x119   :  { %v1314_v58 = vadd.f32 %v1313_v57, %v1312_v56 }
 0x11b   :  { %v375_v59 = vadd.f32 %v1314_v58, %v300_v50  ;;  %v1315_v60 = vpop.f32.mrb[6].mxu0  ;;  %v1551_v50 = vpack.c.bf16 %v53_v49, %v52_v48 }
 0x11c   :  { %v1316_v61 = vpop.f32.mrb[7].mxu0 }
 0x11d   :  { %v2013_v62 = vmax.f32 %v375_v59, 0.0  ;;  %v1317_v63 = vadd.f32 %v1316_v61, %v1315_v60  ;;  %v1057_v59 = vld [vmem:[%s2140_s5] sm:$0xff]  ;;  %v1058_v60 = vld [vmem:[%s2140_s5 + $0x8] sm:$0xff] }
 0x11e   :  { %v1563_v61 = vpack.c.bf16 %v1058_v60, %v1057_v59 }
 0x11f   :  { %v380_v0 = vadd.f32 %v1317_v63, %v305_v55  ;;  %1364 = vmatprep.mubr.msk.f32.mxu1 %vm385_vm0, %v2013_v62  ;;  %v57_v55 = vld [vmem:[%s2139_s4 + $0x78] sm:$0xff]  ;;  %s1623_s4 = smov 64  }
 0x120   :  { %v1559_v56 = vpack.c.bf16 %v57_v55, %v56_v54 }
 0x121   :  { %v2017_v1 = vmax.f32 %v380_v0, 0.0 }
 0x123   :  { %1365 = vmatmul.mubr.msk.f32.vlgmr.msra.gmra.mrb[4].mxu1 %vm385_vm0, %v2017_v1 }
 0x124   :  { %1368 = vmatpush3.xpose.msk.msra.mxu1 %vm385_vm0, %v2013_v62  ;;  %1369 = vmatprep.mubr.msk.f32.mxu1 %vm1620_vm1, %v1619_v34 }
 0x125   :  { %1372 = vmatprep.subr.mxu1 %v1619_v34 }
 0x1f6   :  { %v1366_v2 = vpop.f32.mrb[4].mxu1 }
 0x1f7   :  { %v458_v3 = vpop.f32.mrb[5].mxu1 }
 0x1f8   :  { %1370 = vmatmul.mubr.msk.f32.vlgmr.msra.gmra.mrb[6].mxu1 %vm385_vm0, %v458_v3 }
 0x1f9   :  { %1373 = vmatpush3.xpose.msk.msra.mxu1 %vm385_vm0, %v2017_v1  ;;  %1374 = vmatprep.mubr.msk.f32.mxu1 %vm1620_vm1, %v1619_v34 }
 0x1fa   :  { %1377 = vmatprep.subr.mxu1 %v1619_v34 }
 0x1fc   :  { %1375 = vmatmul.mubr.msk.f32.vlgmr.msra.gmra.mrb[8].mxu1 %vm385_vm0, %v1366_v2 }
 0x1fd   :  { %1378 = vmatpush3.msra.mxu1 %v2013_v62  ;;  %1379 = vmatprep.mubr.msk.f32.mxu1 %vm1620_vm1, %v1619_v34 }
 0x1fe   :  { %1382 = vmatprep.subr.mxu1 %v1619_v34 }
 0x2cb   :  { %v536_v11 = vpop.f32.mrb[6].mxu1 }
 0x2cc   :  { %v627_v12 = vsel %vm625_vm4, -10000.0, %v536_v11  ;;  %v1371_v13 = vpop.f32.mrb[7].mxu1 }
 0x2cd   :  { %v630_v14 = vsel %vm629_vm5, %v627_v12, -inf }
 0x2ce   :  { %631 = vmax.xlane.f32.xlu0 %v630_v14  ;;  %v1059_v14 = vld [vmem:[%s2140_s5 + $0x10] sm:$0xff] }
 0x2cf   :  { %v609_v15 = vpop.f32.mrb[8].mxu1 }
 0x2d0   :  { %v628_v16 = vsel %vm626_vm6, -10000.0, %v609_v15  ;;  %v1376_v17 = vpop.f32.mrb[9].mxu1  ;;  %v1060_v15 = vld [vmem:[%s2140_s5 + $0x18] sm:$0xff]  ;;  %s1624_s5 = smov [#allocation2]  }
 0x2d1   :  { %v633_v18 = vsel %vm629_vm5, %v628_v16, -inf }
 0x2d2   :  { %634 = vmax.xlane.f32.xlu0 %v633_v18 }
 0x35b   :  { %v632_v19 = vpop.xlane.xlu0 %631 }
 0x35c   :  { %v640_v20 = vsub.f32 %v627_v12, %v632_v19  ;;  %vm636_vm7 = vcmp.eq.f32.partialorder %v627_v12, %v632_v19 }
 0x35d   :  { %v638_v37 = vsel %vm636_vm7, 1.0, %v1619_v34 }
 0x35e   :  { %v642_v21 = vmul.f32 1.442695, %v640_v20 }
 0x35f   :  { %v635_v22 = vpop.xlane.xlu0 %634 }
 0x360   :  { %1579 = vpow2.f32 %v642_v21  ;;  %v641_v23 = vsub.f32 %v628_v16, %v635_v22  ;;  %vm637_vm8 = vcmp.eq.f32.partialorder %v628_v16, %v635_v22  ;;  %v1567_v16 = vpack.c.bf16 %v1060_v15, %v1059_v14 }
 0x361   :  { %v639_v39 = vsel %vm637_vm8, 1.0, %v1619_v34 }
 0x362   :  { %v644_v24 = vmul.f32 1.442695, %v641_v23  ;;  %v1201_v23 = vld [vmem:[%s2141_s6] ss:$0 sm:$0xff]  ;;  %s1178_s6 = sshll.u32 %s1624_s5, 4  ;;  %s1179_s6 = int_to_ptr.vmem [resolvable:$true] %s1178_s6 }
 0x363   :  { %s1595_s28 = scalar_lea.vmem %s1179_s6, 256  ;;  %p1600_p1 = scmp.lt.s32.totalorder %s1179_s6, %s1179_s6 }
 0x364   :  { %1581 = vpow2.f32 %v644_v24  ;;  %p1596_p0 = scmp.ne.s32.totalorder %s1179_s6, %s1595_s28  ;;  %p1601_p2 = scmp.lt.s32.totalorder %s1595_s28, %s1595_s28 }
 0x366   :  { %p1602_p3 = por %p1601_p2, %p1600_p1 }
 0x368   :  { %p1603_p4 = pnand %p1602_p3, %p1596_p0 }
 0x36a   :  { %v1580_v25 = vpop.eup %1579 }
 0x36b   :  { %v646_v26 = vsel %vm629_vm5, %v1580_v25, 0.0 }
 0x36c   :  { %647 = vadd.xlane.f32.xlu1 %v646_v26 }
 0x36e   :  { %v1582_v27 = vpop.eup %1581 }
 0x36f   :  { %v649_v28 = vsel %vm629_vm5, %v1582_v27, 0.0 }
 0x370   :  { %650 = vadd.xlane.f32.xlu1 %v649_v28 }
 0x3f9   :  { %v648_v29 = vpop.xlane.xlu1 %647 }
 0x3fa   :  { %1583 = vrcp.f32 %v648_v29 }
 0x3fd   :  { %v651_v30 = vpop.xlane.xlu1 %650 }
 0x3fe   :  { %1585 = vrcp.f32 %v651_v30 }
 0x404   :  { %v1584_v31 = vpop.eup %1583 }
 0x405   :  { %v653_v32 = vmul.f32 %v1584_v31, %v1580_v25 }
 0x407   :  { %1380 = vmatmul.mubr.msk.f32.vlgmr.msra.gmra.mrb[10].mxu1 %vm629_vm5, %v653_v32 }
 0x408   :  { %v1586_v33 = vpop.eup %1585  ;;  %1383 = vmatpush3.msra.mxu1 %v2017_v1  ;;  %1384 = vmatprep.mubr.msk.f32.mxu1 %vm1620_vm1, %v1619_v34 }
 0x409   :  { %v655_v35 = vmul.f32 %v1586_v33, %v1582_v27  ;;  %1387 = vmatprep.subr.mxu1 %v1619_v34 }
 0x40b   :  { %1385 = vmatmul.mubr.msk.f32.vlgmr.msra.gmra.mrb[12].mxu1 %vm629_vm5, %v655_v35 }
 0x40c   :  { %1388 = vmatpush3.msra.mxu1 %v2013_v62  ;;  %1389 = vmatprep.mubr.msk.f32.mxu1 %vm1620_vm1, %v1619_v34 }
 0x40d   :  { %1392 = vmatprep.subr.mxu1 %v1619_v34 }
 0x40f   :  { %1390 = vmatmul.mubr.msk.f32.vlgmr.msra.gmra.mrb[14].mxu1 %vm629_vm5, %v638_v37 }
 0x410   :  { %1393 = vmatpush3.msra.mxu1 %v2017_v1  ;;  %1394 = vmatprep.mubr.msk.f32.mxu1 %vm1620_vm1, %v1619_v34  ;;  %v1543_v34 = vpack.c.bf16 %v49_v44, %v48_v42 }
 0x411   :  { %1564 = vmatprep.subr.bf16.mxu1 %v1563_v61 }
 0x412   :  { %1544 = vmatprep.subr.bf16.mxu0 %v1543_v34 }
 0x413   :  { %1395 = vmatmul.mubr.msk.f32.vlgmr.msra.gmra.mrb[16].mxu1 %vm629_vm5, %v639_v39  ;;  %1546 = vmatpush3.bf16.msra.mxu0 %v1543_v34 }
 0x414   :  { %1548 = vmatprep.subr.bf16.mxu0 %v1547_v47  ;;  %1566 = vmatpush3.bf16.msra.mxu1 %v1563_v61 }
 0x415   :  { %1568 = vmatprep.subr.bf16.mxu1 %v1567_v16 }
 0x417   :  { %1550 = vmatpush3.bf16.msra.mxu0 %v1547_v47 }
 0x418   :  { %1552 = vmatprep.subr.bf16.mxu0 %v1551_v50  ;;  %1570 = vmatpush3.bf16.msra.mxu1 %v1567_v16 }
 0x41b   :  { %1554 = vmatpush3.bf16.msra.mxu0 %v1551_v50 }
 0x41c   :  { %1556 = vmatprep.subr.bf16.mxu0 %v1555_v53 }
 0x41f   :  { %1558 = vmatpush3.bf16.msra.mxu0 %v1555_v53 }
 0x420   :  { %1560 = vmatprep.subr.bf16.mxu0 %v1559_v56 }
 0x423   :  { %1562 = vmatpush3.bf16.msra.mxu0 %v1559_v56 }
 0x4da   :  { %v725_v57 = vpop.f32.mrb[10].mxu1 }
 0x4db   :  { %950 = vrot.lane.b32.xlu0 %v725_v57, %s1622_s18  ;;  %v1381_v58 = vpop.f32.mrb[11].mxu1 }
 0x4de   :  { %v798_v63 = vpop.f32.mrb[12].mxu1 }
 0x4df   :  { %952 = vrot.lane.b32.xlu1 %v798_v63, %s1622_s18  ;;  %v1386_v0 = vpop.f32.mrb[13].mxu1 }
 0x4e2   :  { %v871_v2 = vpop.f32.mrb[14].mxu1 }
 0x4e3   :  { %958 = vrot.lane.b32.xlu1 %v871_v2, %s1623_s4  ;;  %v1391_v3 = vpop.f32.mrb[15].mxu1 }
 0x4e6   :  { %v944_v4 = vpop.f32.mrb[16].mxu1 }
 0x4e7   :  { %960 = vrot.lane.b32.xlu1 %v944_v4, %s1623_s4  ;;  %v1396_v5 = vpop.f32.mrb[17].mxu1 }
 0x54d   :  { %v951_v7 = vpop.permute.xlu0 %950 }
 0x54e   :  { %v964_v8 = vsel %vm385_vm0, %v2013_v62, %v951_v7  ;;  %v971_v62 = vsub.s32 1, %v2004_v36 }
 0x550   :  { %v972_v17 = vrot.slane %v2010_v38, %v971_v62 }
 0x551   :  { %v953_v6 = vpop.permute.xlu1 %952 }
 0x552   :  { %v965_v11 = vsel %vm385_vm0, %v2017_v1, %v953_v6 }
 0x555   :  { %v959_v9 = vpop.permute.xlu1 %958 }
 0x556   :  { %v967_v10 = vsel %vm966_vm9, %v964_v8, %v959_v9 }
 0x557   :  { %1421 = vmatprep.mubr.msk.f32.mxu0 %vm973_vm10, %v967_v10 }
 0x559   :  { %v961_v12 = vpop.permute.xlu1 %960 }
 0x55a   :  { %v968_v13 = vsel %vm966_vm9, %v965_v11, %v961_v12 }
 0x55b   :  { %1422 = vmatmul.mubr.msk.f32.vlgmr.msra.gmra.mrb[8].mxu0 %vm973_vm10, %v968_v13 }
 0x62e   :  { %v1423_v18 = vpop.f32.mrb[8].mxu0 }
 0x62f   :  { %v1052_v1 = vadd.f32 %v1423_v18, %v972_v17  ;;  %v1046_v19 = vpop.f32.mrb[9].mxu0 }
 0x630   :  { %v1047_v20 = vadd.f32 %v1046_v19, %v972_v17 }
 0x631   :  { %v1056_v22 = vmax.f32 %v1052_v1, 0.0 }
 0x632   :  { %v1055_v21 = vmax.f32 %v1047_v20, 0.0 }
 0x634   :  { %1432 = vmatprep.mubr.msk.f32.mxu1 %vm385_vm0, %v1055_v21 }
 0x635   :  { %1433 = vmatmul.mubr.msk.f32.vlgmr.msra.gmra.mrb[18].mxu1 %vm385_vm0, %v1056_v22 }
 0x708   :  { %v1434_v24 = vpop.f32.mrb[18].mxu1 }
 0x709   :  { %v1146_v25 = vadd.f32 %v1434_v24, %v1201_v23  ;;  %v1140_v26 = vpop.f32.mrb[19].mxu1 }
 0x70a   :  { %v1141_v36 = vadd.f32 %v1201_v23, %v1140_v26 }
 0x70b   :  { %1151 = vmax.xlane.f32.xlu1 %v1146_v25 }
 0x70c   :  { %1149 = vmax.xlane.f32.xlu0 %v1141_v36 }
 0x798   :  { %v1152_v38 = vpop.xlane.xlu1 %1151 }
 0x799   :  { %v1150_v27 = vpop.xlane.xlu0 %1149  ;;  %v1154_v28 = vsub.f32 %v1146_v25, %v1152_v38 }
 0x79a   :  { %v1153_v29 = vsub.f32 %v1141_v36, %v1150_v27 }
 0x79b   :  { %v1157_v31 = vmul.f32 1.442695, %v1154_v28 }
 0x79c   :  { %v1155_v30 = vmul.f32 1.442695, %v1153_v29 }
 0x79e   :  { %1587 = vpow2.f32 %v1155_v30 }
 0x79f   :  { %1589 = vpow2.f32 %v1157_v31 }
 0x7a8   :  { %v1588_v32 = vpop.eup %1587 }
 0x7a9   :  { %1159 = vadd.xlane.f32.xlu0 %v1588_v32  ;;  %v1590_v33 = vpop.eup %1589 }
 0x7ad   :  { %1161 = vadd.xlane.f32.xlu0 %v1590_v33 }
 0x836   :  { %v1160_v35 = vpop.xlane.xlu0 %1159 }
 0x837   :  { %1591 = vlog2.f32 %v1160_v35 }
 0x83a   :  { %v1162_v37 = vpop.xlane.xlu0 %1161 }
 0x83b   :  { %1593 = vlog2.f32 %v1162_v37 }
 0x841   :  { %v1592_v39 = vpop.eup %1591 }
 0x842   :  { %v1164_v40 = vmul.f32 0.6931472, %v1592_v39 }
 0x844   :  { %v1167_v41 = vadd.f32 %v1164_v40, %v1150_v27 }
 0x845   :  { %v1594_v42 = vpop.eup %1593 }
 0x846   :  { %v1169_v43 = vsub.f32 %v1141_v36, %v1167_v41  ;;  %v1166_v44 = vmul.f32 0.6931472, %v1594_v42 }
 0x848   :  { %1171 = vst [vmem:[#allocation2] sm:$0xff] %v1169_v43  ;;  %v1168_v34 = vadd.f32 %v1166_v44, %v1152_v38 }
 0x84a   :  { %v1170_v45 = vsub.f32 %v1146_v25, %v1168_v34 }
 0x84c   :  { %1172 = vst [vmem:[#allocation2 + $0x8] sm:$0xff] %v1170_v45 }
 0x84d   :  { %1606 = shalt.err (!%p1603_p4)
}
 0x84e   :  { %s1607_s8 = scalar_lea.hbm %s2142_s7, 256 }
 0x84f   :  { %p1608_p5 = scmp.ne.s32.totalorder %s2142_s7, %s1607_s8  ;;  %p1611_p6 = scmp.lt.u32.totalorder %s1607_s8, %s2142_s7 }
 0x851   :  { %p1613_p7 = pnand %p1611_p6, %p1608_p5 }
 0x853   :  { %1616 = shalt.err (!%p1613_p7)
}
 0x854   :  { %s1625_s12 = smov 128   ;;  %s1626_s13 = smov 8  }
 0x855   :  { %1184 = dma.vmem_to_hbm [thread:$0]  %s1179_s6, 256, %s2142_s7, [#allocation3], %s1625_s12, %s1625_s12, %s1626_s13  }
 0x856   :  { %1617 = dma.done.wait [#allocation3], 256  }
 0x857   :  { %1618 = vsyncadd [#allocation3], 4294967040 }
 0x858   :  { %1188 = vsyncpa [#allocation3], 1 }

</bundles_post_ra>
